<compile_context>
chip_gen: v7x
topology: tpu7x:2x2x1
jax: 0.10.0
libtpu: 0.0.40
codegen_flags: <defaults>
</compile_context>

<pallas_src>
import jax
import jax.numpy as jnp
from jax.experimental import pallas as pl
from jax.experimental.pallas import tpu as pltpu


def _round_up(x, m):
    return ((x + m - 1) // m) * m


def _classification_head_kernel(x_ref, w1_ref, b1_ref, w2_ref, b2_ref, o_ref):
    # x_ref:  [tile_b, D]        (CLS-token features; resident across H steps)
    # w1_ref: [D, tile_h]        b1_ref: [1, tile_h]
    # w2_ref: [tile_h, C_pad]    b2_ref: [1, C_pad]
    # o_ref:  [tile_b, C_pad]    f32 logits; doubles as the reduction accumulator
    h_step = pl.program_id(1)

    @pl.when(h_step == 0)
    def _():
        o_ref[...] = jnp.broadcast_to(b2_ref[...].astype(jnp.float32), o_ref.shape)

    # dense slab: MXU in native dtype, f32 accumulation; bias-add + tanh in f32.
    h = jnp.dot(x_ref[...], w1_ref[...], preferred_element_type=jnp.float32)
    h = jnp.tanh(h + b1_ref[...].astype(jnp.float32))

    # TODO(synk): dropout is identity in eval mode; training-mode dropout
    # (pltpu.prng_seed / pltpu.prng_random_bits masking) not implemented.

    # out_proj slab: accumulate straight into the resident f32 output block.
    o_ref[...] += jnp.dot(h.astype(w2_ref.dtype), w2_ref[...],
                          preferred_element_type=jnp.float32)


def _pad2d(a, rows, cols):
    pr, pc = rows - a.shape[0], cols - a.shape[1]
    if pr == 0 and pc == 0:
        return a
    return jnp.pad(a, ((0, pr), (0, pc)))


def classification_head(features, w1, b1, w2, b2):
    """features: [B, T, D] -> logits: [B, C] (f32)."""
    x_cls = features[:, 0, :]                      # CLS-token select (glue)
    B, D = x_cls.shape
    H = w1.shape[1]
    C = w2.shape[1]

    x_bytes = jnp.dtype(x_cls.dtype).itemsize
    w_bytes = jnp.dtype(w1.dtype).itemsize

    # --- tiling / padding decisions ----------------------------------------
    C_pad = _round_up(C, 128)                      # lane-dense output / matmul N dim
    B8 = _round_up(B, 8)
    max_tb = max(8, ((4 << 20) // max(D * x_bytes, 1)) // 8 * 8)       # x tile <= ~4 MiB
    tile_b = min(B8, 256, max_tb)
    B_pad = _round_up(B8, tile_b)

    h128 = _round_up(H, 128)
    max_th_w1 = max(128, ((6 << 20) // max(D * w_bytes, 1)) // 128 * 128)      # w1 slab <= ~6 MiB
    max_th_w2 = max(128, ((6 << 20) // max(C_pad * w_bytes, 1)) // 128 * 128)  # w2 slab <= ~6 MiB
    tile_h = min(h128, max_th_w1, max_th_w2)
    H_pad = _round_up(H, tile_h)

    nb = B_pad // tile_b
    nh = H_pad // tile_h

    # --- zero-pad operands (exact: tanh(0)=0; padded rows/cols sliced off) --
    x_p = _pad2d(x_cls, B_pad, D)
    w1_p = _pad2d(w1, D, H_pad)
    b1_p = _pad2d(b1.reshape(1, H), 1, H_pad)
    w2_p = _pad2d(w2, H_pad, C_pad)
    b2_p = _pad2d(b2.reshape(1, C), 1, C_pad)

    # Working set (double-buffered inputs + resident output block) -> VMEM limit.
    vmem_need = (2 * tile_b * D * x_bytes
                 + 2 * (D * tile_h + tile_h) * w_bytes
                 + 2 * (tile_h * C_pad + C_pad) * w_bytes
                 + 2 * tile_b * C_pad * 4)
    vmem_limit = int(min(max(vmem_need + (8 << 20), 16 << 20), 64 << 20))

    cost = pl.CostEstimate(
        flops=2 * B_pad * (D * H_pad + H_pad * C_pad),
        transcendentals=B_pad * H_pad,
        bytes_accessed=(nb * (D * H_pad + H_pad + H_pad * C_pad + C_pad)) * w_bytes
                       + B_pad * D * x_bytes + B_pad * C_pad * 4,
    )

    out_padded = pl.pallas_call(
        _classification_head_kernel,
        out_shape=jax.ShapeDtypeStruct((B_pad, C_pad), jnp.float32),
        grid_spec=pltpu.PrefetchScalarGridSpec(
            num_scalar_prefetch=0,
            grid=(nb, nh),
            in_specs=[
                pl.BlockSpec((tile_b, D), lambda b, h: (b, 0)),       # x (resident per b tile)
                pl.BlockSpec((D, tile_h), lambda b, h: (0, h)),       # w1 slab (streamed)
                pl.BlockSpec((1, tile_h), lambda b, h: (0, h)),       # b1 slab
                pl.BlockSpec((tile_h, C_pad), lambda b, h: (h, 0)),   # w2 slab (streamed)
                pl.BlockSpec((1, C_pad), lambda b, h: (0, 0)),        # b2
            ],
            out_specs=pl.BlockSpec((tile_b, C_pad), lambda b, h: (b, 0)),
        ),
        compiler_params=pltpu.CompilerParams(
            dimension_semantics=("parallel", "arbitrary"),
            vmem_limit_bytes=vmem_limit,
        ),
        cost_estimate=cost,
    )(x_p, w1_p, b1_p, w2_p, b2_p)

    # Slice away sublane / lane padding.
    return out_padded[:B, :C]


if __name__ == "__main__":
    # Small shapes consistent with the module's forward.
    B, T, D = 2, 8, 32     # batch, seq, input_dim
    H = 32                 # inner_dim
    C = 4                  # num_classes

    key = jax.random.PRNGKey(0)
    k_feat, k_w1, k_b1, k_w2, k_b2 = jax.random.split(key, 5)

    features = jax.random.normal(k_feat, (B, T, D), dtype=jnp.float32)

    # Deterministic parameter init (matches nn.Linear shapes; W stored transposed).
    w1 = jax.random.normal(k_w1, (D, H), dtype=jnp.float32) * 0.02
    b1 = jax.random.normal(k_b1, (H,), dtype=jnp.float32) * 0.02
    w2 = jax.random.normal(k_w2, (H, C), dtype=jnp.float32) * 0.02
    b2 = jax.random.normal(k_b2, (C,), dtype=jnp.float32) * 0.02

    out = classification_head(features, w1, b1, w2, b2)
    out = jax.block_until_ready(out)

    # Pure-JAX reference check.
    x = features[:, 0, :]
    ref = jnp.tanh(x @ w1 + b1) @ w2 + b2
    assert out.shape == (B, C)
    assert jnp.allclose(out, ref.astype(out.dtype), atol=1e-5, rtol=1e-5), "mismatch vs reference"

    print("KERNEL_OK")
</pallas_src>

<mosaic_0001>
module attributes {stable_mosaic.version = 11 : i64} {
  func.func @_classification_head_kernel(%arg0: i32, %arg1: i32, %arg2: memref<8x32xf32, #tpu.memory_space<vmem>>, %arg3: memref<32x128xf32, #tpu.memory_space<vmem>>, %arg4: memref<1x128xf32, #tpu.memory_space<vmem>>, %arg5: memref<128x128xf32, #tpu.memory_space<vmem>>, %arg6: memref<1x128xf32, #tpu.memory_space<vmem>>, %arg7: memref<8x128xf32, #tpu.memory_space<vmem>>) attributes {dimension_semantics = [#tpu.dimension_semantics<parallel>, #tpu.dimension_semantics<arbitrary>], iteration_bounds = array<i64: 1, 1>, scalar_prefetch = 0 : i64, scratch_operands = 0 : i64, tpu.core_type = #tpu.core_type<tc>, window_params = [{transform_indices = @transform_0, window_bounds = array<i64: 8, 32>}, {transform_indices = @transform_1, window_bounds = array<i64: 32, 128>}, {transform_indices = @transform_2, window_bounds = array<i64: 1, 128>}, {transform_indices = @transform_3, window_bounds = array<i64: 128, 128>}, {pipeline_mode = #tpu.pipeline_mode<synchronous>, transform_indices = @transform_4, window_bounds = array<i64: 1, 128>}, {transform_indices = @transform_5, window_bounds = array<i64: 8, 128>}]} {
    %c0_i32 = arith.constant 0 : i32
    %0 = arith.cmpi eq, %arg1, %c0_i32 : i32
    %1 = arith.extui %0 : i1 to i32
    %c0_i32_0 = arith.constant 0 : i32
    %2 = arith.cmpi ne, %1, %c0_i32_0 : i32
    scf.if %2 {
      %c0_13 = arith.constant 0 : index
      %c0_14 = arith.constant 0 : index
      %15 = vector.load %arg6[%c0_13, %c0_14] : memref<1x128xf32, #tpu.memory_space<vmem>>, vector<1x128xf32>
      %16 = vector.shape_cast %15 : vector<1x128xf32> to vector<1x128xf32>
      %17 = vector.broadcast %16 : vector<1x128xf32> to vector<8x128xf32>
      %c0_15 = arith.constant 0 : index
      %c0_16 = arith.constant 0 : index
      %18 = vector.load %arg7[%c0_15, %c0_16] : memref<8x128xf32, #tpu.memory_space<vmem>>, vector<8x128xf32>
      tpu.vector_store %arg7[%c0_15, %c0_16], %17 {strides = array<i32>} : memref<8x128xf32, #tpu.memory_space<vmem>>, vector<8x128xf32>,
    } else {
    }
    %c0 = arith.constant 0 : index
    %c0_1 = arith.constant 0 : index
    %3 = vector.load %arg2[%c0, %c0_1] : memref<8x32xf32, #tpu.memory_space<vmem>>, vector<8x32xf32>
    %c0_2 = arith.constant 0 : index
    %c0_3 = arith.constant 0 : index
    %4 = vector.load %arg3[%c0_2, %c0_3] : memref<32x128xf32, #tpu.memory_space<vmem>>, vector<32x128xf32>
    %cst = arith.constant dense<0.000000e+00> : vector<8x128xf32>
    %5 = tpu.matmul %3, %4, %cst {dimension_numbers = #tpu.dot_dimension_numbers<[1], [0], [0], [1], [0, 0, 1, 1], [], []>} : vector<8x32xf32>, vector<32x128xf32>, vector<8x128xf32> -> vector<8x128xf32>
    %c0_4 = arith.constant 0 : index
    %c0_5 = arith.constant 0 : index
    %6 = vector.load %arg4[%c0_4, %c0_5] : memref<1x128xf32, #tpu.memory_space<vmem>>, vector<1x128xf32>
    %7 = vector.broadcast %6 : vector<1x128xf32> to vector<8x128xf32>
    %8 = arith.addf %5, %7 : vector<8x128xf32>
    %9 = math.tanh %8 : vector<8x128xf32>
    %c0_6 = arith.constant 0 : index
    %c0_7 = arith.constant 0 : index
    %10 = vector.load %arg7[%c0_6, %c0_7] : memref<8x128xf32, #tpu.memory_space<vmem>>, vector<8x128xf32>
    %c0_8 = arith.constant 0 : index
    %c0_9 = arith.constant 0 : index
    %11 = vector.load %arg5[%c0_8, %c0_9] : memref<128x128xf32, #tpu.memory_space<vmem>>, vector<128x128xf32>
    %cst_10 = arith.constant dense<0.000000e+00> : vector<8x128xf32>
    %12 = tpu.matmul %9, %11, %cst_10 {dimension_numbers = #tpu.dot_dimension_numbers<[1], [0], [0], [1], [0, 0, 1, 1], [], []>} : vector<8x128xf32>, vector<128x128xf32>, vector<8x128xf32> -> vector<8x128xf32>
    %13 = arith.addf %10, %12 : vector<8x128xf32>
    %c0_11 = arith.constant 0 : index
    %c0_12 = arith.constant 0 : index
    %14 = vector.load %arg7[%c0_11, %c0_12] : memref<8x128xf32, #tpu.memory_space<vmem>>, vector<8x128xf32>
    tpu.vector_store %arg7[%c0_11, %c0_12], %13 {strides = array<i32>} : memref<8x128xf32, #tpu.memory_space<vmem>>, vector<8x128xf32>,
    return
  }
  func.func @transform_0(%arg0: i32, %arg1: i32) -> (i32, i32) {
    %c0_i32 = arith.constant 0 : i32
    %c0_i32_0 = arith.constant 0 : i32
    return %arg0, %c0_i32 : i32, i32
  }
  func.func @transform_1(%arg0: i32, %arg1: i32) -> (i32, i32) {
    %c0_i32 = arith.constant 0 : i32
    %c0_i32_0 = arith.constant 0 : i32
    return %c0_i32, %arg1 : i32, i32
  }
  func.func @transform_2(%arg0: i32, %arg1: i32) -> (i32, i32) {
    %c0_i32 = arith.constant 0 : i32
    %c0_i32_0 = arith.constant 0 : i32
    return %c0_i32, %arg1 : i32, i32
  }
  func.func @transform_3(%arg0: i32, %arg1: i32) -> (i32, i32) {
    %c0_i32 = arith.constant 0 : i32
    %c0_i32_0 = arith.constant 0 : i32
    return %arg1, %c0_i32 : i32, i32
  }
  func.func @transform_4(%arg0: i32, %arg1: i32) -> (i32, i32) {
    %c0_i32 = arith.constant 0 : i32
    %c0_i32_0 = arith.constant 0 : i32
    %c0_i32_1 = arith.constant 0 : i32
    return %c0_i32, %c0_i32_0 : i32, i32
  }
  func.func @transform_5(%arg0: i32, %arg1: i32) -> (i32, i32) {
    %c0_i32 = arith.constant 0 : i32
    %c0_i32_0 = arith.constant 0 : i32
    return %arg0, %c0_i32 : i32, i32
  }
}

</mosaic_0001>

<bundles_post_ra>
// kernel: tpu_custom_call.1
= control target key start
LH: loop header
LB: loop body
LE: loop exit
PB: predicated region body
PF: predicated region fallthrough
CT: control target
= control target key end

     0   :  { %10 = vsyncpa [#allocation3], 0  ;;  %s569_s0 = inlined_call_operand.hbm [shape: f32[8,32], index: 0, kind: input, shape index: {}]   ;;  %s570_s1 = inlined_call_operand.hbm [shape: f32[32,128], index: 1, kind: input, shape index: {}]   ;;  %s571_s2 = inlined_call_operand.vmem [shape: f32[1,128], index: 2, kind: input, shape index: {}]   ;;  %s572_s3 = inlined_call_operand.hbm [shape: f32[128,128], index: 3, kind: input, shape index: {}]   ;;  %s573_s4 = inlined_call_operand.vmem [shape: f32[1,128], index: 4, kind: input, shape index: {}]   ;;  %s574_s5 = inlined_call_operand.hbm [shape: f32[8,128], index: 5, kind: output, shape index: {}]  }
   0x1   :  { %11 = vsyncpa [#allocation6], 0 }
   0x2   :  { %12 = vsyncpa [#allocation4], 0  ;;  %s470_s18 = smov [#allocation5]   ;;  %s376_s22 = scalar_lea.hbm %s570_s1, 512 }
   0x3   :  { %s28_s19 = sshll.u32 %s470_s18, 4  ;;  %p377_p0 = scmp.ne.s32.totalorder %s570_s1, %s376_s22  ;;  %s29_s19 = int_to_ptr.vmem [resolvable:$true] %s28_s19 }
   0x4   :  { %p380_p1 = scmp.lt.u32.totalorder %s376_s22, %s570_s1 }
   0x6   :  { %p382_p2 = pnand %p380_p1, %p377_p0 }
   0x8   :  { %385 = shalt.err (!%p382_p2)
}
   0x9   :  { %s386_s27 = scalar_lea.vmem %s29_s19, 512  ;;  %p391_p4 = scmp.lt.s32.totalorder %s29_s19, %s29_s19 }
   0xa   :  { %p387_p3 = scmp.ne.s32.totalorder %s29_s19, %s386_s27  ;;  %p392_p5 = scmp.lt.s32.totalorder %s386_s27, %s386_s27 }
   0xc   :  { %p393_p6 = por %p392_p5, %p391_p4 }
   0xe   :  { %p394_p7 = pnand %p393_p6, %p387_p3 }
  0x10   :  { %397 = shalt.err (!%p394_p7)
}
  0x11   :  { %s471_s28 = smov 128   ;;  %s472_s29 = smov 8  }
  0x12   :  { %34 = dma.hbm_to_vmem [thread:$0]  %s570_s1, 512, %s29_s19, [#allocation6], %s471_s28, %s471_s28, %s472_s29  }
  0x13   :  { %s473_s7 = smov [#allocation2]   ;;  %s474_s9 = smov [#allocation7]  }
  0x14   :  { %s19_s8 = sshll.u32 %s473_s7, 4  ;;  %s42_s10 = sshll.u32 %s474_s9, 4  ;;  %s20_s8 = int_to_ptr.vmem [resolvable:$true] %s19_s8  ;;  %s43_s10 = int_to_ptr.vmem [resolvable:$true] %s42_s10 }
  0x15   :  { %s398_s13 = scalar_lea.hbm %s569_s0, 128 }
  0x16   :  { %p399_p8 = scmp.ne.s32.totalorder %s569_s0, %s398_s13  ;;  %p402_p9 = scmp.lt.u32.totalorder %s398_s13, %s569_s0 }
  0x18   :  { %p404_p10 = pnand %p402_p9, %p399_p8 }
  0x1a   :  { %407 = shalt.err (!%p404_p10)
}
  0x1b   :  { %s408_s1 = scalar_lea.vmem %s20_s8, 128  ;;  %p413_p12 = scmp.lt.s32.totalorder %s20_s8, %s20_s8 }
  0x1c   :  { %p409_p11 = scmp.ne.s32.totalorder %s20_s8, %s408_s1  ;;  %p414_p13 = scmp.lt.s32.totalorder %s408_s1, %s408_s1 }
  0x1e   :  { %p415_p0 = por %p414_p13, %p413_p12 }
  0x20   :  { %p416_p1 = pnand %p415_p0, %p409_p11 }
  0x22   :  { %419 = shalt.err (!%p416_p1)
}
  0x23   :  { %22 = dma.hbm_to_vmem [thread:$0]  %s569_s0, 128, %s20_s8, [#allocation3]  }
  0x24   :  { %s420_s22 = scalar_lea.hbm %s572_s3, 2048 }
  0x25   :  { %p421_p2 = scmp.ne.s32.totalorder %s572_s3, %s420_s22  ;;  %p424_p3 = scmp.lt.u32.totalorder %s420_s22, %s572_s3 }
  0x27   :  { %p426_p4 = pnand %p424_p3, %p421_p2 }
  0x29   :  { %429 = shalt.err (!%p426_p4)
}
  0x2a   :  { %s430_s27 = scalar_lea.vmem %s43_s10, 2048  ;;  %p435_p6 = scmp.lt.s32.totalorder %s43_s10, %s43_s10 }
  0x2b   :  { %p431_p5 = scmp.ne.s32.totalorder %s43_s10, %s430_s27  ;;  %p436_p7 = scmp.lt.s32.totalorder %s430_s27, %s430_s27 }
  0x2d   :  { %p437_p8 = por %p436_p7, %p435_p6 }
  0x2f   :  { %p438_p9 = pnand %p437_p8, %p431_p5 }
  0x31   :  { %441 = shalt.err (!%p438_p9)
}
  0x32   :  { %48 = dma.hbm_to_vmem [thread:$0]  %s572_s3, 2048, %s43_s10, [#allocation6], %s471_s28, %s471_s28, %s472_s29  }
  0x33   :  { %464 = dma.done.wait [#allocation3], 128  }
  0x34   :  { %465 = vsyncadd [#allocation3], 4294967168 }
  0x35   :  { %466 = dma.done.wait [#allocation6], 2560  }
  0x36   :  { %467 = vsyncadd [#allocation6], 4294964736  ;;  %v475_v0 = vmov 0.0|0.0   ;;  %vm476_vm0 = vmmov 0   ;;  %v477_v1 = vmov 0.0   ;;  %v73_v2 = vld [vmem:[#allocation5] sm:$0xff] }
  0x37   :  { %335 = vmatprep.subr.bf16.mxu0 %v475_v0  ;;  %297 = vmatprep.mubr.msk.f32.mxu0 %vm476_vm0, %v477_v1  ;;  %v74_v3 = vld [vmem:[#allocation5 + $0x8] sm:$0xff]  ;;  %v75_v4 = vld [vmem:[#allocation5 + $0x10] sm:$0xff]  ;;  %v76_v6 = vld [vmem:[#allocation5 + $0x18] sm:$0xff]  ;;  %vm84_vm1 = vcmask 261120   ;;  %s478_s7 = smov [#allocation8]  }
  0x38   :  { %341 = vmatprep.subr.bf16.mxu1 %v475_v0  ;;  %332 = vmatprep.mubr.msk.f32.mxu1 %vm476_vm0, %v477_v1  ;;  %v336_v5 = vpack.c.bf16 %v74_v3, %v73_v2  ;;  %v160_v7 = vld [vmem:[#allocation7] sm:$0xff]  ;;  %v161_v8 = vld [vmem:[#allocation7 + $0x8] sm:$0xff]  ;;  %v162_v9 = vld [vmem:[#allocation7 + $0x10] sm:$0xff]  ;;  %v339_v11 = vpack.c.bf16 %v76_v6, %v75_v4  ;;  %s254_s8 = sshll.u32 %s478_s7, 4  ;;  %s255_s8 = int_to_ptr.vmem [resolvable:$true] %s254_s8 }
  0x39   :  { %v163_v10 = vld [vmem:[#allocation7 + $0x18] sm:$0xff]  ;;  %v342_v12 = vpack.c.bf16 %v161_v8, %v160_v7  ;;  %v164_v14 = vld [vmem:[#allocation7 + $0x20] sm:$0xff]  ;;  %v165_v15 = vld [vmem:[#allocation7 + $0x28] sm:$0xff]  ;;  %s442_s9 = scalar_lea.vmem %s255_s8, 128  ;;  %p447_p11 = scmp.lt.s32.totalorder %s255_s8, %s255_s8 }
  0x3a   :  { %337 = vmatpush3.bf16.msra.mxu0 %v336_v5  ;;  %v345_v13 = vpack.c.bf16 %v163_v10, %v162_v9  ;;  %v72_v16 = vld [vmem:[#allocation2] sm:$0xff]  ;;  %v348_v17 = vpack.c.bf16 %v165_v15, %v164_v14  ;;  %v166_v18 = vld [vmem:[#allocation7 + $0x30] sm:$0xff]  ;;  %v168_v21 = vld [vmem:[#allocation7 + $0x40] sm:$0xff]  ;;  %p443_p10 = scmp.ne.s32.totalorder %s255_s8, %s442_s9  ;;  %p448_p12 = scmp.lt.s32.totalorder %s442_s9, %s442_s9 }
  0x3b   :  { %338 = vmatprep.subr.bf16.mxu0 %v475_v0  ;;  %343 = vmatpush3.bf16.msra.mxu1 %v342_v12  ;;  %v167_v19 = vld [vmem:[#allocation7 + $0x38] sm:$0xff]  ;;  %v169_v22 = vld [vmem:[#allocation7 + $0x48] sm:$0xff]  ;;  %v170_v24 = vld [vmem:[#allocation7 + $0x50] sm:$0xff] }
  0x3c   :  { %344 = vmatprep.subr.bf16.mxu1 %v475_v0  ;;  %v351_v20 = vpack.c.bf16 %v167_v19, %v166_v18  ;;  %v354_v23 = vpack.c.bf16 %v169_v22, %v168_v21  ;;  %v171_v25 = vld [vmem:[#allocation7 + $0x58] sm:$0xff]  ;;  %v172_v27 = vld [vmem:[#allocation7 + $0x60] sm:$0xff]  ;;  %v173_v28 = vld [vmem:[#allocation7 + $0x68] sm:$0xff]  ;;  %p449_p13 = por %p448_p12, %p447_p11 }
  0x3d   :  { %v357_v26 = vpack.c.bf16 %v171_v25, %v170_v24  ;;  %v360_v29 = vpack.c.bf16 %v173_v28, %v172_v27  ;;  %v174_v30 = vld [vmem:[#allocation7 + $0x70] sm:$0xff]  ;;  %v175_v31 = vld [vmem:[#allocation7 + $0x78] sm:$0xff] }
  0x3e   :  { %340 = vmatpush3.bf16.msra.mxu0 %v339_v11  ;;  %v363_v32 = vpack.c.bf16 %v175_v31, %v174_v30  ;;  %v265_v33 = vld [vmem:[%s571_s2] ss:$0 sm:$0xff]  ;;  %p450_p0 = pnand %p449_p13, %p443_p10 }
  0x3f   :  { %346 = vmatpush3.bf16.msra.mxu1 %v345_v13  ;;  %v264_v38 = vld [vmem:[%s573_s4] ss:$0 sm:$0xff] }
  0x40   :  { %347 = vmatprep.subr.bf16.mxu1 %v475_v0 }
  0x41   :  { %298 = vmatmul.mubr.msk.f32.vlgmr.msra.gmra.mrb[0].mxu0 %vm84_vm1, %v72_v16 }
  0x43   :  { %349 = vmatpush3.bf16.msra.mxu1 %v348_v17 }
  0x44   :  { %350 = vmatprep.subr.bf16.mxu1 %v475_v0 }
  0x47   :  { %352 = vmatpush3.bf16.msra.mxu1 %v351_v20 }
  0x48   :  { %353 = vmatprep.subr.bf16.mxu1 %v475_v0 }
  0x4b   :  { %355 = vmatpush3.bf16.msra.mxu1 %v354_v23 }
  0x4c   :  { %356 = vmatprep.subr.bf16.mxu1 %v475_v0 }
  0x4f   :  { %358 = vmatpush3.bf16.msra.mxu1 %v357_v26 }
  0x50   :  { %359 = vmatprep.subr.bf16.mxu1 %v475_v0 }
  0x53   :  { %361 = vmatpush3.bf16.msra.mxu1 %v360_v29 }
  0x54   :  { %362 = vmatprep.subr.bf16.mxu1 %v475_v0 }
  0x57   :  { %364 = vmatpush3.bf16.msra.mxu1 %v363_v32 }
 0x114   :  { %v154_v34 = vpop.f32.mrb[0].mxu0 }
 0x115   :  { %v155_v35 = vadd.f32 %v265_v33, %v154_v34  ;;  %v299_v36 = vpop.f32.mrb[1].mxu0 }
 0x117   :  { %374 = vtanh.f32 %v155_v35 }
 0x121   :  { %v375_v37 = vpop.eup %374 }
 0x122   :  { %333 = vmatmul.mubr.f32.vlgmr.msra.gmra.mrb[0].mxu1 %v375_v37 }
 0x1f5   :  { %v242_v39 = vpop.f32.mrb[0].mxu1 }
 0x1f6   :  { %v246_v40 = vadd.f32 %v264_v38, %v242_v39  ;;  %v334_v41 = vpop.f32.mrb[1].mxu1 }
 0x1f8   :  { %247 = vst [vmem:[#allocation8] sm:$0xff] %v246_v40 }
 0x1f9   :  { %453 = shalt.err (!%p450_p0)
}
 0x1fa   :  { %s454_s11 = scalar_lea.hbm %s574_s5, 128 }
 0x1fb   :  { %p455_p1 = scmp.ne.s32.totalorder %s574_s5, %s454_s11  ;;  %p458_p2 = scmp.lt.u32.totalorder %s454_s11, %s574_s5 }
 0x1fd   :  { %p460_p3 = pnand %p458_p2, %p455_p1 }
 0x1ff   :  { %463 = shalt.err (!%p460_p3)
}
 0x200   :  { %257 = dma.vmem_to_hbm [thread:$0]  %s255_s8, 128, %s574_s5, [#allocation4]  }
 0x201   :  { %468 = dma.done.wait [#allocation4], 128  }
 0x202   :  { %469 = vsyncadd [#allocation4], 4294967168 }
 0x203   :  { %261 = vsyncpa [#allocation3], 1 }
 0x204   :  { %262 = vsyncpa [#allocation6], 1 }
 0x205   :  { %263 = vsyncpa [#allocation4], 1 }

</bundles_post_ra>
